<compile_context>
chip_gen: v7x
topology: tpu7x:2x2x1
jax: 0.10.0
libtpu: 0.0.40
codegen_flags: <defaults>
</compile_context>

<pallas_src>
import functools

import jax
import jax.numpy as jnp
from jax.experimental import pallas as pl
from jax.experimental.pallas import tpu as pltpu


_F = 128  # spatial positions folded into each lane-row; keeps output stores lane-dense


def _deinterleave_kernel(x_ref, o_ref, xt_ref, *, num_ch):
    """(rows, 128*C) lane-dense NHWC block -> (C, rows, 128) lane-dense NCHW block.

    xt_ref: (128*C, rows) f32 VMEM scratch holding the transposed block so each
    channel can be extracted with a native sublane-strided read.
    """
    x = x_ref[...]
    if x.dtype != jnp.float32:            # supports uint8 image producers for free
        x = x.astype(jnp.float32)
    # Scale while fully lane-dense (VPU work, hidden under the DMAs), then one
    # dense 2-D transpose moves the interleaved channel index onto sublanes.
    xt_ref[...] = (x * jnp.float32(1.0 / 255.0)).T
    # Channel c now lives on sublanes c, c+C, c+2C, ... of the scratch: pull it
    # out with a sublane-strided read and transpose the (128, rows) panel back,
    # so every store is an unmasked, full-vreg (rows, 128) block.
    for c in range(num_ch):
        ch = xt_ref[pl.ds(c, _F, stride=num_ch), :]   # (128, rows)
        o_ref[c, :, :] = ch.T                         # (rows, 128)


def _pick_rows(nq: int, num_ch: int, n_batch: int) -> int:
    """Rows (of 128*C input elements) per block.

    Targets ~1 MiB of real data per input block (amortizes the ~0.35 us/step
    overhead), must divide nq and be a multiple of 8, and is shrunk -- but not
    below ~256 KiB blocks -- until the grid has enough parallel steps to feed
    both v7x TensorCores.
    """
    target = max(8, (1 << 20) // (_F * num_ch * 4))
    best = None
    r = 8
    limit = min(nq, target)
    while r <= limit:
        if nq % r == 0:
            best = r
        r += 8
    if best is None:
        return nq  # tiny / odd extents: a single full-extent block (still legal)
    while (n_batch * (nq // best) < 8 and best % 16 == 0
           and best * _F * num_ch * 4 >= (512 << 10)):
        best //= 2
    return best


def transposing_forward(x):
    """x: (N, H, W, C) -> (N, C, H, W), values scaled by 1/255 (float32 out)."""
    N, H, W, C = x.shape
    hw = H * W

    # Pad the flattened spatial extent so every block (and every output store)
    # stays lane-dense; large images are padded so an 8-divisible row tiling
    # always exists.  The pad is sliced off after the kernel.
    hw_pad = -(-hw // _F) * _F
    nq = hw_pad // _F
    if nq > 64 and nq % 8:
        nq = -(-nq // 8) * 8
        hw_pad = nq * _F

    x2 = x.reshape(N, hw, C)
    if hw_pad != hw:
        x2 = jnp.pad(x2, ((0, 0), (0, hw_pad - hw), (0, 0)))
    x3 = x2.reshape(N, nq, _F * C)          # lane-dense view: 128*C lanes per row

    rows = _pick_rows(nq, C, N)
    n_tiles = nq // rows

    # Explicit VMEM budget: 2x double-buffered (in + out) blocks + scratch + slack.
    in_block = rows * _F * C * x.dtype.itemsize
    out_block = C * rows * _F * 4
    scratch_bytes = _F * C * rows * 4
    vmem_need = 2 * (in_block + out_block) + scratch_bytes + (2 << 20)
    vmem_limit = int(min(max(vmem_need, 16 << 20), 96 << 20))

    kernel = functools.partial(_deinterleave_kernel, num_ch=C)

    y4 = pl.pallas_call(
        kernel,
        out_shape=jax.ShapeDtypeStruct((N, C, nq, _F), jnp.float32),
        grid_spec=pltpu.PrefetchScalarGridSpec(
            num_scalar_prefetch=0,
            grid=(N, n_tiles),
            in_specs=[
                # (None, ...) squeezes the batch dim out of the kernel refs.
                pl.BlockSpec((None, rows, _F * C), lambda n, t: (n, t, 0)),
            ],
            out_specs=pl.BlockSpec((None, C, rows, _F), lambda n, t: (n, 0, t, 0)),
            scratch_shapes=[pltpu.VMEM((_F * C, rows), jnp.float32)],
        ),
        compiler_params=pltpu.CompilerParams(
            dimension_semantics=("parallel", "parallel"),
            vmem_limit_bytes=vmem_limit,
        ),
        cost_estimate=pl.CostEstimate(
            flops=N * hw_pad * C,
            transcendentals=0,
            bytes_accessed=N * hw_pad * C * (x.dtype.itemsize + 4),
        ),
    )(x3)

    y = y4.reshape(N, C, hw_pad)
    if hw_pad != hw:
        y = y[:, :, :hw]
    return y.reshape(N, C, H, W)


if __name__ == "__main__":
    key = jax.random.PRNGKey(0)
    # Small NHWC input: batch=2, H=16, W=16, C=4 (image-like values in [0, 255]).
    x = jax.random.uniform(
        key, (2, 16, 16, 4), dtype=jnp.float32, minval=0.0, maxval=255.0
    )

    y = jax.block_until_ready(transposing_forward(x))

    # Reference check (plain JAX).
    y_ref = jnp.transpose(x / 255.0, (0, 3, 1, 2))
    assert y.shape == (2, 4, 16, 16)
    assert jnp.allclose(y, y_ref, atol=1e-6, rtol=1e-6)

    print("KERNEL_OK")
</pallas_src>

<mosaic_0001>
module attributes {stable_mosaic.version = 11 : i64} {
  func.func @_deinterleave_kernel(%arg0: i32, %arg1: i32, %arg2: memref<1x2x512xf32, #tpu.memory_space<vmem>>, %arg3: memref<1x4x2x128xf32, #tpu.memory_space<vmem>>, %arg4: memref<512x2xf32, #tpu.memory_space<vmem>>) attributes {dimension_semantics = [#tpu.dimension_semantics<parallel>, #tpu.dimension_semantics<parallel>], iteration_bounds = array<i64: 2, 1>, scalar_prefetch = 0 : i64, scratch_operands = 1 : i64, tpu.core_type = #tpu.core_type<tc>, window_params = [{transform_indices = @transform_0, window_bounds = array<i64: 1, 2, 512>}, {transform_indices = @transform_1, window_bounds = array<i64: 1, 4, 2, 128>}]} {
    %c0 = arith.constant 0 : index
    %c0_0 = arith.constant 0 : index
    %c0_1 = arith.constant 0 : index
    %0 = vector.load %arg2[%c0, %c0_0, %c0_1] : memref<1x2x512xf32, #tpu.memory_space<vmem>>, vector<1x2x512xf32>
    %1 = vector.shape_cast %0 : vector<1x2x512xf32> to vector<2x512xf32>
    %cst = arith.constant 0.00392156886 : f32
    %2 = vector.broadcast %cst : f32 to vector<2x512xf32>
    %3 = arith.mulf %1, %2 : vector<2x512xf32>
    %4 = tpu.transpose %3, [1, 0] : vector<2x512xf32> -> vector<512x2xf32>
    %c0_2 = arith.constant 0 : index
    %c0_3 = arith.constant 0 : index
    %5 = vector.load %arg4[%c0_2, %c0_3] : memref<512x2xf32, #tpu.memory_space<vmem>>, vector<512x2xf32>
    tpu.vector_store %arg4[%c0_2, %c0_3], %4 {strides = array<i32>} : memref<512x2xf32, #tpu.memory_space<vmem>>, vector<512x2xf32>,
    %c0_4 = arith.constant 0 : index
    %c0_5 = arith.constant 0 : index
    %6 = tpu.strided_load %arg4[%c0_4, %c0_5] {strides = array<i32: 4, 1>} : memref<512x2xf32, #tpu.memory_space<vmem>>, vector<128x2xf32>
    %7 = tpu.transpose %6, [1, 0] : vector<128x2xf32> -> vector<2x128xf32>
    %c0_6 = arith.constant 0 : index
    %c0_7 = arith.constant 0 : index
    %c0_8 = arith.constant 0 : index
    %c0_9 = arith.constant 0 : index
    %8 = vector.load %arg3[%c0_6, %c0_7, %c0_8, %c0_9] : memref<1x4x2x128xf32, #tpu.memory_space<vmem>>, vector<1x1x2x128xf32>
    %9 = vector.shape_cast %8 : vector<1x1x2x128xf32> to vector<2x128xf32>
    %10 = vector.shape_cast %7 : vector<2x128xf32> to vector<1x1x2x128xf32>
    tpu.vector_store %arg3[%c0_6, %c0_7, %c0_8, %c0_9], %10 {strides = array<i32>} : memref<1x4x2x128xf32, #tpu.memory_space<vmem>>, vector<1x1x2x128xf32>,
    %c1 = arith.constant 1 : index
    %c0_10 = arith.constant 0 : index
    %11 = tpu.strided_load %arg4[%c1, %c0_10] {strides = array<i32: 4, 1>} : memref<512x2xf32, #tpu.memory_space<vmem>>, vector<128x2xf32>
    %12 = tpu.transpose %11, [1, 0] : vector<128x2xf32> -> vector<2x128xf32>
    %c0_11 = arith.constant 0 : index
    %c1_12 = arith.constant 1 : index
    %c0_13 = arith.constant 0 : index
    %c0_14 = arith.constant 0 : index
    %13 = vector.load %arg3[%c0_11, %c1_12, %c0_13, %c0_14] : memref<1x4x2x128xf32, #tpu.memory_space<vmem>>, vector<1x1x2x128xf32>
    %14 = vector.shape_cast %13 : vector<1x1x2x128xf32> to vector<2x128xf32>
    %15 = vector.shape_cast %12 : vector<2x128xf32> to vector<1x1x2x128xf32>
    tpu.vector_store %arg3[%c0_11, %c1_12, %c0_13, %c0_14], %15 {strides = array<i32>} : memref<1x4x2x128xf32, #tpu.memory_space<vmem>>, vector<1x1x2x128xf32>,
    %c2 = arith.constant 2 : index
    %c0_15 = arith.constant 0 : index
    %16 = tpu.strided_load %arg4[%c2, %c0_15] {strides = array<i32: 4, 1>} : memref<512x2xf32, #tpu.memory_space<vmem>>, vector<128x2xf32>
    %17 = tpu.transpose %16, [1, 0] : vector<128x2xf32> -> vector<2x128xf32>
    %c0_16 = arith.constant 0 : index
    %c2_17 = arith.constant 2 : index
    %c0_18 = arith.constant 0 : index
    %c0_19 = arith.constant 0 : index
    %18 = vector.load %arg3[%c0_16, %c2_17, %c0_18, %c0_19] : memref<1x4x2x128xf32, #tpu.memory_space<vmem>>, vector<1x1x2x128xf32>
    %19 = vector.shape_cast %18 : vector<1x1x2x128xf32> to vector<2x128xf32>
    %20 = vector.shape_cast %17 : vector<2x128xf32> to vector<1x1x2x128xf32>
    tpu.vector_store %arg3[%c0_16, %c2_17, %c0_18, %c0_19], %20 {strides = array<i32>} : memref<1x4x2x128xf32, #tpu.memory_space<vmem>>, vector<1x1x2x128xf32>,
    %c3 = arith.constant 3 : index
    %c0_20 = arith.constant 0 : index
    %21 = tpu.strided_load %arg4[%c3, %c0_20] {strides = array<i32: 4, 1>} : memref<512x2xf32, #tpu.memory_space<vmem>>, vector<128x2xf32>
    %22 = tpu.transpose %21, [1, 0] : vector<128x2xf32> -> vector<2x128xf32>
    %c0_21 = arith.constant 0 : index
    %c3_22 = arith.constant 3 : index
    %c0_23 = arith.constant 0 : index
    %c0_24 = arith.constant 0 : index
    %23 = vector.load %arg3[%c0_21, %c3_22, %c0_23, %c0_24] : memref<1x4x2x128xf32, #tpu.memory_space<vmem>>, vector<1x1x2x128xf32>
    %24 = vector.shape_cast %23 : vector<1x1x2x128xf32> to vector<2x128xf32>
    %25 = vector.shape_cast %22 : vector<2x128xf32> to vector<1x1x2x128xf32>
    tpu.vector_store %arg3[%c0_21, %c3_22, %c0_23, %c0_24], %25 {strides = array<i32>} : memref<1x4x2x128xf32, #tpu.memory_space<vmem>>, vector<1x1x2x128xf32>,
    return
  }
  func.func @transform_0(%arg0: i32, %arg1: i32) -> (i32, i32, i32) {
    %c0_i32 = arith.constant 0 : i32
    %c0_i32_0 = arith.constant 0 : i32
    return %arg0, %arg1, %c0_i32 : i32, i32, i32
  }
  func.func @transform_1(%arg0: i32, %arg1: i32) -> (i32, i32, i32, i32) {
    %c0_i32 = arith.constant 0 : i32
    %c0_i32_0 = arith.constant 0 : i32
    %c0_i32_1 = arith.constant 0 : i32
    return %arg0, %c0_i32, %arg1, %c0_i32_0 : i32, i32, i32, i32
  }
}

</mosaic_0001>

<bundles_post_ra>
// kernel: tpu_custom_call.1
= control target key start
LH: loop header
LB: loop body
LE: loop exit
PB: predicated region body
PF: predicated region fallthrough
CT: control target
= control target key end

     0   :  { %6 = vsyncpa [#allocation4], 0  ;;  %s1188_s0 = inlined_call_operand.hbm [shape: f32[2,2,512], index: 0, kind: input, shape index: {}]   ;;  %s1189_s1 = inlined_call_operand.hbm [shape: f32[2,4,2,128], index: 1, kind: output, shape index: {}]  }
   0x1   :  { %8 = vsyncpa [#allocation4 + $0x1], 0 }
   0x2   :  { %9 = vsyncpa [#allocation5], 0 }
   0x3   :  { %11 = vsyncpa [#allocation5 + $0x1], 0  ;;  %s946_s6 = smov 0   ;;  %s948_s7 = smov 0  }
   0x4   :  { %s950_s8 = smov 0   ;;  %s952_s9 = smov 0  }
   0x5   :  { %s954_s10 = smov 0   ;;  %s956_s11 = smov 0  }
   0x6 LB: > { %s731_s12 = sadd.s32 4294967295, %s929_s11   ;;  %s732_s13 = sadd.s32 4294967294, %s929_s11   ;;  %s929_s11 = sphi %s956_s11, %s17_s11   ;;  %s925_s10 = sphi %s954_s10, %s1205_s10   ;;  %s921_s9 = sphi %s952_s9, %s1204_s9   ;;  %s917_s8 = sphi %s950_s8, %s1203_s8   ;;  %s913_s7 = sphi %s948_s7, %s1202_s7   ;;  %s909_s6 = sphi %s946_s6, %s1201_s6  }
   0x7   : > { %s29_s14 = sadd.s32 1, %s925_s10  ;;  %s38_s15 = sadd.s32 1, %s917_s8 }
   0x8   : > { %p31_p0 = scmp.ge.s32.totalorder %s29_s14, 2  ;;  %p45_p1 = scmp.ne.s32.totalorder %s917_s8, %s913_s7 }
   0x9   : > { %p46_p2 = scmp.eq.s32.totalorder %s929_s11, 0  ;;  %p51_p3 = scmp.ne.s32.totalorder %s913_s7, %s909_s6 }
   0xa   : > { %s1207_s14 = smov (%p31_p0, %s29_s14), 0  ;;  %p52_p5 = scmp.eq.s32.totalorder %s731_s12, 0 }
   0xb   : > { %p987_p4 = por %p46_p2, %p45_p1  ;;  %s33_s17 = ssub.s32 %s925_s10, %s1207_s14 }
   0xc   : > { %p77_p6 = scmp.eq.s32.totalorder %s731_s12, 1  ;;  %p36_p7 = scmp.eq.s32.totalorder %s33_s17, 0 }
   0xd   : > { %p993_p8 = por %p52_p5, %p51_p3  ;;  %p83_p10 = scmp.eq.s32.totalorder %s732_s13, 1 }
   0xe   : > { %p997_p9 = por %p77_p6, %p45_p1  ;;  %p763_p13 = scmp.lt.s32.totalorder %s929_s11, 2 }
   0xf   : > { %s1002_s20 = scalar_select %p36_p7, %s917_s8, %s38_s15  }
  0x10   : > { %s1193_s19 = scalar_select %p997_p9, 1, 0 }
  0x11   : > { %p1004_p11 = por %p83_p10, %p51_p3  ;;  %s103_s22 = sand.u32 1, %s917_s8  }
  0x12   : > { %s735_s23 = sshll.u32 %s103_s22, 3  ;;  %s749_s24 = sshll.u32 %s925_s10, 7 }
  0x13   : > { %s1194_s21 = scalar_select %p1004_p11, 1, 0 }
  0x14   : > { %s1015_s27 = scalar_lea.hbm %s1188_s0, %s749_s24  ;;  %s107_s28 = scalar_lea.vmem [#allocation3], %s735_s23 }
  0x15   : > { %s117_s29 = sshll.u32 %s107_s28, 4  ;;  %p1021_p0 = pnand %p763_p13, %p987_p4  ;;  %s1017_s29 = int_to_ptr.vmem [resolvable:$true] %s117_s29 }
  0x16   : > { %s104_s2 = scalar_lea.sflag [#allocation4], %s103_s22  ;;  %s817_s3 = scalar_lea.hbm %s1015_s27, 128 }
  0x17   : > { %p818_p3 = scmp.ne.s32.totalorder %s1015_s27, %s817_s3  ;;  %p819_p5 = pneg %p1021_p0 }
  0x18   : > { %s822_s12 = scalar_lea.hbm %s1188_s0, 256  ;;  %p823_p4 = scmp.lt.u32.totalorder %s1015_s27, %s1188_s0 }
  0x19   : > { %p820_p6 = pnand %p819_p5, %p818_p3  ;;  %p824_p10 = scmp.lt.u32.totalorder %s822_s12, %s817_s3 }
  0x1a   : > { %p826_p12 = scmp.lt.u32.totalorder %s817_s3, %s1015_s27 }
  0x1b   : > { %p821_p7 = pneg %p820_p6  ;;  %p825_p13 = por %p824_p10, %p823_p4 }
  0x1d   : > { %p827_p1 = por %p826_p12, %p825_p13 }
  0x1f   : > { %p828_p2 = pnand %p827_p1, %p821_p7 }
  0x21   : > { %831 = shalt.err (!%p828_p2)
}
  0x22   : > { %s832_s16 = scalar_lea.vmem %s1017_s29, 128  ;;  %s931_s17 = smov [#allocation3]  }
  0x23   : > { %p833_p3 = scmp.ne.s32.totalorder %s1017_s29, %s832_s16  ;;  %s837_s22 = sshll.u32 %s931_s17, 4  ;;  %s838_s22 = int_to_ptr.vmem [resolvable:$false] %s837_s22 }
  0x24   : > { %s839_s23 = scalar_lea.vmem %s838_s22, 256  ;;  %p840_p9 = scmp.lt.s32.totalorder %s1017_s29, %s838_s22 }
  0x25   : > { %p835_p6 = pnand %p833_p3, %p819_p5  ;;  %p841_p4 = scmp.lt.s32.totalorder %s839_s23, %s832_s16 }
  0x27   : > { %p836_p11 = pneg %p835_p6  ;;  %p842_p10 = por %p841_p4, %p840_p9 }
  0x29   : > { %p843_p12 = pnand %p842_p10, %p836_p11 }
  0x2b   : > { %846 = shalt.err (!%p843_p12)
}
  0x2c   : > { %758 = dma.hbm_to_vmem [thread:$0]  (!%p1021_p0), %s1015_s27, 128, %s1017_s29, %s104_s2  }
  0x2d   : > { %p1196_p1 = scmp.lt.s32.totalorder %s929_s11, 3  ;;  %p1197_p2 = scmp.ge.s32.totalorder %s929_s11, 1 }
  0x2f   : > { %p123_p5 = pnand %p1197_p2, %p1196_p1 }
  0x30   : > { %s1057_s24 = sand.u32 (!%p123_p5), 1, %s913_s7  }
  0x31   : > { %126 = sbr.rel (%p123_p5) target bundleno = 507 (0x1fb), region = 24  ;;  %s739_s25 = sshll.u32 (!%p123_p5), %s1057_s24, 3 }
  0x32   : > { %s129_s26 = scalar_lea.sflag (!%p123_p5), [#allocation4], %s1057_s24  ;;  %s132_s28 = scalar_lea.vmem (!%p123_p5), [#allocation3], %s739_s25 }
  0x38   : > { %900 = dma.done.wait (%p993_p8), %s129_s26, 128  }
  0x39   : > { %902 = vsyncadd (%p993_p8), %s129_s26, 4294967168  ;;  %v158_v0 = vlaneseq  ;;  %v932_v1 = vmov 1983009808   ;;  %v151_v6 = vld [vmem:[%s132_s28] sm:$0xff]  ;;  %vm303_vm0 = vcmask 15360   ;;  %s150_s18 = scalar_lea.vmem [#allocation6], %s739_s25 }
  0x3a   : > { %v156_v2 = vunpack.c.l.s4 %v932_v1  ;;  %v152_v7 = vmul.f32 0.003921569, %v151_v6  ;;  %s645_s27 = sshll.u32 %s150_s18, 4  ;;  %s750_s29 = sshll.u32 %s921_s9, 7  ;;  %s1134_s27 = int_to_ptr.vmem [resolvable:$true] %s645_s27 }
  0x3b   : > { %v159_v3 = vshrl.u32 %v158_v0, 7  ;;  %s1139_s3 = scalar_lea.hbm %s1189_s1, %s750_s29  ;;  %s631_s4 = scalar_lea.sflag [#allocation5], %s1057_s24 }
  0x3c   : > { %v157_v4 = vunpack.c.0.s8 %v156_v2  ;;  %v154_v9 = vcombine.high %v152_v7, %v152_v7  ;;  %s847_s5 = scalar_lea.vmem %s1134_s27, 128  ;;  %p1198_p9 = scmp.ne.s32.totalorder %s1193_s19, 0 }
  0x3d   : > { %p848_p8 = scmp.ne.s32.totalorder %s1134_s27, %s847_s5  ;;  %s933_s9 = smov [#allocation6]  }
  0x3e   : > { %v160_v5 = vsub.s32 %v157_v4, %v159_v3  ;;  %s851_s12 = sshll.u32 %s933_s9, 4  ;;  %s852_s12 = int_to_ptr.vmem [resolvable:$false] %s851_s12 }
  0x3f   : > { %p849_p11 = pnand %p848_p8, %p1198_p9  ;;  %s853_s13 = scalar_lea.vmem %s852_s12, 256 }
  0x40   : > { %v161_v8 = vrot.slane %v152_v7, %v160_v5  ;;  %v168_v10 = vrot.slane %v154_v9, %v160_v5  ;;  %p854_p7 = scmp.lt.s32.totalorder %s1134_s27, %s852_s12  ;;  %p855_p13 = scmp.lt.s32.totalorder %s853_s13, %s847_s5 }
  0x41   : > { %p850_p0 = pneg %p849_p11 }
  0x42   : > { %175 = vxpose.xlu0.b32.start.end [1/1] (short) %v161_v8, 128  ;;  %239 = vxpose.xlu1.b32.start.end [1/1] (short) %v168_v10, 128  ;;  %v169_v11 = vcombine.high %v161_v8, %v161_v8  ;;  %v170_v12 = vcombine.high %v168_v10, %v168_v10  ;;  %p856_p3 = por %p855_p13, %p854_p7 }
  0x44   : > { %p857_p6 = pnand %p856_p3, %p850_p0 }
  0x7f   : > { %207 = vxpose.xlu0.b32.start.end [1/1] (short) %v169_v11, 128  ;;  %271 = vxpose.xlu1.b32.start.end [1/1] (short) %v170_v12, 128 }
  0xc2   : > { %v191_v13 = vpop.trf.xlu0  ;;  %v255_v14 = vpop.trf.xlu1 }
  0xc3   : > { %304 = vst.msk [vmem:[#allocation2] sm:$0xff] %vm303_vm0, %v191_v13  ;;  %336 = vst.msk [vmem:[#allocation2 + $0x100] sm:$0xff] %vm303_vm0, %v255_v14 }
  0xc6   : > { %v192_v15 = vpop.trf.xlu0  ;;  %v256_v16 = vpop.trf.xlu1 }
  0xc7   : > { %305 = vst.msk [vmem:[#allocation2 + $0x8] sm:$0xff] %vm303_vm0, %v192_v15  ;;  %337 = vst.msk [vmem:[#allocation2 + $0x108] sm:$0xff] %vm303_vm0, %v256_v16 }
  0xca   : > { %v193_v17 = vpop.trf.xlu0  ;;  %v257_v18 = vpop.trf.xlu1 }
  0xcb   : > { %306 = vst.msk [vmem:[#allocation2 + $0x10] sm:$0xff] %vm303_vm0, %v193_v17  ;;  %338 = vst.msk [vmem:[#allocation2 + $0x110] sm:$0xff] %vm303_vm0, %v257_v18 }
  0xce   : > { %v194_v19 = vpop.trf.xlu0  ;;  %v258_v20 = vpop.trf.xlu1 }
  0xcf   : > { %307 = vst.msk [vmem:[#allocation2 + $0x18] sm:$0xff] %vm303_vm0, %v194_v19  ;;  %339 = vst.msk [vmem:[#allocation2 + $0x118] sm:$0xff] %vm303_vm0, %v258_v20 }
  0xd2   : > { %v195_v21 = vpop.trf.xlu0  ;;  %v259_v22 = vpop.trf.xlu1 }
  0xd3   : > { %308 = vst.msk [vmem:[#allocation2 + $0x20] sm:$0xff] %vm303_vm0, %v195_v21  ;;  %340 = vst.msk [vmem:[#allocation2 + $0x120] sm:$0xff] %vm303_vm0, %v259_v22 }
  0xd6   : > { %v196_v23 = vpop.trf.xlu0  ;;  %v368_v24 = vld [vmem:[#allocation2] ss:$4 sm:$0xff]  ;;  %v433_v25 = vld [vmem:[#allocation2 + $0x1] ss:$4 sm:$0xff]  ;;  %v260_v26 = vpop.trf.xlu1 }
  0xd7   : > { %309 = vst.msk [vmem:[#allocation2 + $0x28] sm:$0xff] %vm303_vm0, %v196_v23  ;;  %399 = vxpose.xlu0.b32.start [1/16] (narrow) %v368_v24, 8  ;;  %464 = vxpose.xlu1.b32.start [1/16] (narrow) %v433_v25, 8  ;;  %341 = vst.msk [vmem:[#allocation2 + $0x128] sm:$0xff] %vm303_vm0, %v260_v26 }
  0xda   : > { %v197_v27 = vpop.trf.xlu0  ;;  %v261_v28 = vpop.trf.xlu1 }
  0xdb   : > { %310 = vst.msk [vmem:[#allocation2 + $0x30] sm:$0xff] %vm303_vm0, %v197_v27  ;;  %342 = vst.msk [vmem:[#allocation2 + $0x130] sm:$0xff] %vm303_vm0, %v261_v28 }
  0xde   : > { %v198_v29 = vpop.trf.xlu0  ;;  %v262_v30 = vpop.trf.xlu1 }
  0xdf   : > { %311 = vst.msk [vmem:[#allocation2 + $0x38] sm:$0xff] %vm303_vm0, %v198_v29  ;;  %343 = vst.msk [vmem:[#allocation2 + $0x138] sm:$0xff] %vm303_vm0, %v262_v30  ;;  %v384_v29 = vld [vmem:[#allocation2 + $0x100] ss:$4 sm:$0xff]  ;;  %v449_v30 = vld [vmem:[#allocation2 + $0x101] ss:$4 sm:$0xff] }
  0xe2   : > { %v199_v31 = vpop.trf.xlu0  ;;  %v263_v32 = vpop.trf.xlu1 }
  0xe3   : > { %312 = vst.msk [vmem:[#allocation2 + $0x40] sm:$0xff] %vm303_vm0, %v199_v31  ;;  %344 = vst.msk [vmem:[#allocation2 + $0x140] sm:$0xff] %vm303_vm0, %v263_v32 }
  0xe6   : > { %v200_v33 = vpop.trf.xlu0  ;;  %v370_v34 = vld [vmem:[#allocation2 + $0x20] ss:$4 sm:$0xff]  ;;  %v435_v35 = vld [vmem:[#allocation2 + $0x21] ss:$4 sm:$0xff]  ;;  %v264_v36 = vpop.trf.xlu1 }
  0xe7   : > { %313 = vst.msk [vmem:[#allocation2 + $0x48] sm:$0xff] %vm303_vm0, %v200_v33  ;;  %400 = vxpose.xlu0.b32.cont [2/16] (narrow) %v370_v34, 8  ;;  %465 = vxpose.xlu1.b32.cont [2/16] (narrow) %v435_v35, 8  ;;  %345 = vst.msk [vmem:[#allocation2 + $0x148] sm:$0xff] %vm303_vm0, %v264_v36  ;;  %v386_v31 = vld [vmem:[#allocation2 + $0x120] ss:$4 sm:$0xff] }
  0xe8   : > { %v451_v32 = vld [vmem:[#allocation2 + $0x121] ss:$4 sm:$0xff] }
  0xea   : > { %v201_v37 = vpop.trf.xlu0  ;;  %v265_v38 = vpop.trf.xlu1 }
  0xeb   : > { %314 = vst.msk [vmem:[#allocation2 + $0x50] sm:$0xff] %vm303_vm0, %v201_v37  ;;  %346 = vst.msk [vmem:[#allocation2 + $0x150] sm:$0xff] %vm303_vm0, %v265_v38 }
  0xee   : > { %v202_v39 = vpop.trf.xlu0  ;;  %v266_v40 = vpop.trf.xlu1 }
  0xef   : > { %315 = vst.msk [vmem:[#allocation2 + $0x58] sm:$0xff] %vm303_vm0, %v202_v39  ;;  %347 = vst.msk [vmem:[#allocation2 + $0x158] sm:$0xff] %vm303_vm0, %v266_v40 }
  0xf2   : > { %v203_v41 = vpop.trf.xlu0  ;;  %v267_v42 = vpop.trf.xlu1 }
  0xf3   : > { %316 = vst.msk [vmem:[#allocation2 + $0x60] sm:$0xff] %vm303_vm0, %v203_v41  ;;  %348 = vst.msk [vmem:[#allocation2 + $0x160] sm:$0xff] %vm303_vm0, %v267_v42 }
  0xf6   : > { %v204_v43 = vpop.trf.xlu0  ;;  %v372_v44 = vld [vmem:[#allocation2 + $0x40] ss:$4 sm:$0xff]  ;;  %v437_v45 = vld [vmem:[#allocation2 + $0x41] ss:$4 sm:$0xff]  ;;  %v268_v46 = vpop.trf.xlu1 }
  0xf7   : > { %317 = vst.msk [vmem:[#allocation2 + $0x68] sm:$0xff] %vm303_vm0, %v204_v43  ;;  %401 = vxpose.xlu0.b32.cont [3/16] (narrow) %v372_v44, 8  ;;  %466 = vxpose.xlu1.b32.cont [3/16] (narrow) %v437_v45, 8  ;;  %349 = vst.msk [vmem:[#allocation2 + $0x168] sm:$0xff] %vm303_vm0, %v268_v46  ;;  %v388_v33 = vld [vmem:[#allocation2 + $0x140] ss:$4 sm:$0xff] }
  0xf8   : > { %v453_v34 = vld [vmem:[#allocation2 + $0x141] ss:$4 sm:$0xff]  ;;  %v565_v45 = vld [vmem:[#allocation2 + $0x3] ss:$4 sm:$0xff]  ;;  %v499_v46 = vld [vmem:[#allocation2 + $0x2] ss:$4 sm:$0xff] }
  0xfa   : > { %v205_v47 = vpop.trf.xlu0  ;;  %v269_v48 = vpop.trf.xlu1 }
  0xfb   : > { %318 = vst.msk [vmem:[#allocation2 + $0x70] sm:$0xff] %vm303_vm0, %v205_v47  ;;  %350 = vst.msk [vmem:[#allocation2 + $0x170] sm:$0xff] %vm303_vm0, %v269_v48  ;;  %v567_v47 = vld [vmem:[#allocation2 + $0x23] ss:$4 sm:$0xff]  ;;  %v501_v48 = vld [vmem:[#allocation2 + $0x22] ss:$4 sm:$0xff] }
  0xfe   : > { %v206_v49 = vpop.trf.xlu0  ;;  %v270_v50 = vpop.trf.xlu1 }
  0xff   : > { %319 = vst.msk [vmem:[#allocation2 + $0x78] sm:$0xff] %vm303_vm0, %v206_v49  ;;  %351 = vst.msk [vmem:[#allocation2 + $0x178] sm:$0xff] %vm303_vm0, %v270_v50  ;;  %v569_v49 = vld [vmem:[#allocation2 + $0x43] ss:$4 sm:$0xff]  ;;  %v503_v50 = vld [vmem:[#allocation2 + $0x42] ss:$4 sm:$0xff] }
 0x102   : > { %v223_v51 = vpop.trf.xlu0  ;;  %v287_v52 = vpop.trf.xlu1 }
 0x103   : > { %320 = vst.msk [vmem:[#allocation2 + $0x80] sm:$0xff] %vm303_vm0, %v223_v51  ;;  %352 = vst.msk [vmem:[#allocation2 + $0x180] sm:$0xff] %vm303_vm0, %v287_v52 }
 0x106   : > { %v224_v53 = vpop.trf.xlu0  ;;  %v374_v54 = vld [vmem:[#allocation2 + $0x60] ss:$4 sm:$0xff]  ;;  %v439_v55 = vld [vmem:[#allocation2 + $0x61] ss:$4 sm:$0xff]  ;;  %v288_v56 = vpop.trf.xlu1  ;;  %v571_v51 = vld [vmem:[#allocation2 + $0x63] ss:$4 sm:$0xff] }
 0x107   : > { %321 = vst.msk [vmem:[#allocation2 + $0x88] sm:$0xff] %vm303_vm0, %v224_v53  ;;  %402 = vxpose.xlu0.b32.cont [4/16] (narrow) %v374_v54, 8  ;;  %467 = vxpose.xlu1.b32.cont [4/16] (narrow) %v439_v55, 8  ;;  %353 = vst.msk [vmem:[#allocation2 + $0x188] sm:$0xff] %vm303_vm0, %v288_v56  ;;  %v390_v35 = vld [vmem:[#allocation2 + $0x160] ss:$4 sm:$0xff] }
 0x108   : > { %v455_v36 = vld [vmem:[#allocation2 + $0x161] ss:$4 sm:$0xff]  ;;  %v505_v52 = vld [vmem:[#allocation2 + $0x62] ss:$4 sm:$0xff] }
 0x10a   : > { %v225_v57 = vpop.trf.xlu0  ;;  %v289_v58 = vpop.trf.xlu1 }
 0x10b   : > { %322 = vst.msk [vmem:[#allocation2 + $0x90] sm:$0xff] %vm303_vm0, %v225_v57  ;;  %354 = vst.msk [vmem:[#allocation2 + $0x190] sm:$0xff] %vm303_vm0, %v289_v58 }
 0x10e   : > { %v226_v59 = vpop.trf.xlu0  ;;  %v290_v60 = vpop.trf.xlu1 }
 0x10f   : > { %323 = vst.msk [vmem:[#allocation2 + $0x98] sm:$0xff] %vm303_vm0, %v226_v59  ;;  %355 = vst.msk [vmem:[#allocation2 + $0x198] sm:$0xff] %vm303_vm0, %v290_v60 }
 0x112   : > { %v227_v61 = vpop.trf.xlu0  ;;  %v291_v62 = vpop.trf.xlu1 }
 0x113   : > { %324 = vst.msk [vmem:[#allocation2 + $0xa0] sm:$0xff] %vm303_vm0, %v227_v61  ;;  %356 = vst.msk [vmem:[#allocation2 + $0x1a0] sm:$0xff] %vm303_vm0, %v291_v62  ;;  %v581_v61 = vld [vmem:[#allocation2 + $0x103] ss:$4 sm:$0xff]  ;;  %v515_v62 = vld [vmem:[#allocation2 + $0x102] ss:$4 sm:$0xff] }
 0x116   : > { %v228_v63 = vpop.trf.xlu0  ;;  %v376_v0 = vld [vmem:[#allocation2 + $0x80] ss:$4 sm:$0xff]  ;;  %v441_v1 = vld [vmem:[#allocation2 + $0x81] ss:$4 sm:$0xff]  ;;  %v292_v2 = vpop.trf.xlu1  ;;  %v573_v53 = vld [vmem:[#allocation2 + $0x83] ss:$4 sm:$0xff] }
 0x117   : > { %325 = vst.msk [vmem:[#allocation2 + $0xa8] sm:$0xff] %vm303_vm0, %v228_v63  ;;  %403 = vxpose.xlu0.b32.cont [5/16] (narrow) %v376_v0, 8  ;;  %468 = vxpose.xlu1.b32.cont [5/16] (narrow) %v441_v1, 8  ;;  %357 = vst.msk [vmem:[#allocation2 + $0x1a8] sm:$0xff] %vm303_vm0, %v292_v2  ;;  %v457_v37 = vld [vmem:[#allocation2 + $0x181] ss:$4 sm:$0xff] }
 0x118   : > { %v392_v38 = vld [vmem:[#allocation2 + $0x180] ss:$4 sm:$0xff]  ;;  %v507_v54 = vld [vmem:[#allocation2 + $0x82] ss:$4 sm:$0xff]  ;;  %v583_v63 = vld [vmem:[#allocation2 + $0x123] ss:$4 sm:$0xff] }
 0x119   : > { %v517_v0 = vld [vmem:[#allocation2 + $0x122] ss:$4 sm:$0xff]  ;;  %v585_v1 = vld [vmem:[#allocation2 + $0x143] ss:$4 sm:$0xff] }
 0x11a   : > { %v229_v3 = vpop.trf.xlu0  ;;  %v293_v4 = vpop.trf.xlu1  ;;  %v519_v2 = vld [vmem:[#allocation2 + $0x142] ss:$4 sm:$0xff] }
 0x11b   : > { %326 = vst.msk [vmem:[#allocation2 + $0xb0] sm:$0xff] %vm303_vm0, %v229_v3  ;;  %358 = vst.msk [vmem:[#allocation2 + $0x1b0] sm:$0xff] %vm303_vm0, %v293_v4  ;;  %v587_v3 = vld [vmem:[#allocation2 + $0x163] ss:$4 sm:$0xff]  ;;  %v521_v4 = vld [vmem:[#allocation2 + $0x162] ss:$4 sm:$0xff] }
 0x11e   : > { %v230_v5 = vpop.trf.xlu0  ;;  %v294_v6 = vpop.trf.xlu1 }
 0x11f   : > { %327 = vst.msk [vmem:[#allocation2 + $0xb8] sm:$0xff] %vm303_vm0, %v230_v5  ;;  %359 = vst.msk [vmem:[#allocation2 + $0x1b8] sm:$0xff] %vm303_vm0, %v294_v6  ;;  %v589_v5 = vld [vmem:[#allocation2 + $0x183] ss:$4 sm:$0xff]  ;;  %v523_v6 = vld [vmem:[#allocation2 + $0x182] ss:$4 sm:$0xff] }
 0x122   : > { %v231_v7 = vpop.trf.xlu0  ;;  %v295_v8 = vpop.trf.xlu1 }
 0x123   : > { %328 = vst.msk [vmem:[#allocation2 + $0xc0] sm:$0xff] %vm303_vm0, %v231_v7  ;;  %360 = vst.msk [vmem:[#allocation2 + $0x1c0] sm:$0xff] %vm303_vm0, %v295_v8 }
 0x126   : > { %v232_v9 = vpop.trf.xlu0  ;;  %v378_v10 = vld [vmem:[#allocation2 + $0xa0] ss:$4 sm:$0xff]  ;;  %v443_v11 = vld [vmem:[#allocation2 + $0xa1] ss:$4 sm:$0xff]  ;;  %v296_v12 = vpop.trf.xlu1  ;;  %v575_v55 = vld [vmem:[#allocation2 + $0xa3] ss:$4 sm:$0xff] }
 0x127   : > { %329 = vst.msk [vmem:[#allocation2 + $0xc8] sm:$0xff] %vm303_vm0, %v232_v9  ;;  %404 = vxpose.xlu0.b32.cont [6/16] (narrow) %v378_v10, 8  ;;  %469 = vxpose.xlu1.b32.cont [6/16] (narrow) %v443_v11, 8  ;;  %361 = vst.msk [vmem:[#allocation2 + $0x1c8] sm:$0xff] %vm303_vm0, %v296_v12  ;;  %v459_v39 = vld [vmem:[#allocation2 + $0x1a1] ss:$4 sm:$0xff] }
 0x128   : > { %v394_v40 = vld [vmem:[#allocation2 + $0x1a0] ss:$4 sm:$0xff]  ;;  %v509_v56 = vld [vmem:[#allocation2 + $0xa2] ss:$4 sm:$0xff]  ;;  %v591_v7 = vld [vmem:[#allocation2 + $0x1a3] ss:$4 sm:$0xff] }
 0x129   : > { %v525_v8 = vld [vmem:[#allocation2 + $0x1a2] ss:$4 sm:$0xff] }
 0x12a   : > { %v233_v13 = vpop.trf.xlu0  ;;  %v297_v14 = vpop.trf.xlu1 }
 0x12b   : > { %330 = vst.msk [vmem:[#allocation2 + $0xd0] sm:$0xff] %vm303_vm0, %v233_v13  ;;  %362 = vst.msk [vmem:[#allocation2 + $0x1d0] sm:$0xff] %vm303_vm0, %v297_v14 }
 0x12e   : > { %v234_v15 = vpop.trf.xlu0  ;;  %v298_v16 = vpop.trf.xlu1 }
 0x12f   : > { %331 = vst.msk [vmem:[#allocation2 + $0xd8] sm:$0xff] %vm303_vm0, %v234_v15  ;;  %363 = vst.msk [vmem:[#allocation2 + $0x1d8] sm:$0xff] %vm303_vm0, %v298_v16 }
 0x132   : > { %v235_v17 = vpop.trf.xlu0  ;;  %v299_v18 = vpop.trf.xlu1 }
 0x133   : > { %332 = vst.msk [vmem:[#allocation2 + $0xe0] sm:$0xff] %vm303_vm0, %v235_v17  ;;  %364 = vst.msk [vmem:[#allocation2 + $0x1e0] sm:$0xff] %vm303_vm0, %v299_v18 }
 0x136   : > { %v236_v19 = vpop.trf.xlu0  ;;  %v380_v20 = vld [vmem:[#allocation2 + $0xc0] ss:$4 sm:$0xff]  ;;  %v445_v21 = vld [vmem:[#allocation2 + $0xc1] ss:$4 sm:$0xff]  ;;  %v300_v22 = vpop.trf.xlu1  ;;  %v577_v57 = vld [vmem:[#allocation2 + $0xc3] ss:$4 sm:$0xff] }
 0x137   : > { %333 = vst.msk [vmem:[#allocation2 + $0xe8] sm:$0xff] %vm303_vm0, %v236_v19  ;;  %405 = vxpose.xlu0.b32.cont [7/16] (narrow) %v380_v20, 8  ;;  %470 = vxpose.xlu1.b32.cont [7/16] (narrow) %v445_v21, 8  ;;  %365 = vst.msk [vmem:[#allocation2 + $0x1e8] sm:$0xff] %vm303_vm0, %v300_v22  ;;  %v461_v41 = vld [vmem:[#allocation2 + $0x1c1] ss:$4 sm:$0xff] }
 0x138   : > { %v396_v42 = vld [vmem:[#allocation2 + $0x1c0] ss:$4 sm:$0xff]  ;;  %v511_v58 = vld [vmem:[#allocation2 + $0xc2] ss:$4 sm:$0xff]  ;;  %v593_v9 = vld [vmem:[#allocation2 + $0x1c3] ss:$4 sm:$0xff] }
 0x139   : > { %v527_v10 = vld [vmem:[#allocation2 + $0x1c2] ss:$4 sm:$0xff] }
 0x13a   : > { %v237_v23 = vpop.trf.xlu0  ;;  %v301_v24 = vpop.trf.xlu1 }
 0x13b   : > { %334 = vst.msk [vmem:[#allocation2 + $0xf0] sm:$0xff] %vm303_vm0, %v237_v23  ;;  %366 = vst.msk [vmem:[#allocation2 + $0x1f0] sm:$0xff] %vm303_vm0, %v301_v24 }
 0x13e   : > { %v238_v25 = vpop.trf.xlu0  ;;  %v302_v26 = vpop.trf.xlu1 }
 0x13f   : > { %335 = vst.msk [vmem:[#allocation2 + $0xf8] sm:$0xff] %vm303_vm0, %v238_v25  ;;  %367 = vst.msk [vmem:[#allocation2 + $0x1f8] sm:$0xff] %vm303_vm0, %v302_v26 }
 0x146   : > { %v382_v27 = vld [vmem:[#allocation2 + $0xe0] ss:$4 sm:$0xff]  ;;  %v447_v28 = vld [vmem:[#allocation2 + $0xe1] ss:$4 sm:$0xff]  ;;  %v579_v59 = vld [vmem:[#allocation2 + $0xe3] ss:$4 sm:$0xff] }
 0x147   : > { %406 = vxpose.xlu0.b32.cont [8/16] (narrow) %v382_v27, 8  ;;  %471 = vxpose.xlu1.b32.cont [8/16] (narrow) %v447_v28, 8  ;;  %v463_v43 = vld [vmem:[#allocation2 + $0x1e1] ss:$4 sm:$0xff]  ;;  %v398_v44 = vld [vmem:[#allocation2 + $0x1e0] ss:$4 sm:$0xff] }
 0x148   : > { %v513_v60 = vld [vmem:[#allocation2 + $0xe2] ss:$4 sm:$0xff]  ;;  %v595_v11 = vld [vmem:[#allocation2 + $0x1e3] ss:$4 sm:$0xff] }
 0x149   : > { %v529_v12 = vld [vmem:[#allocation2 + $0x1e2] ss:$4 sm:$0xff] }
 0x14b   : > { %407 = vxpose.xlu0.b32.cont [9/16] (narrow) %v384_v29, 8  ;;  %472 = vxpose.xlu1.b32.cont [9/16] (narrow) %v449_v30, 8 }
 0x14f   : > { %408 = vxpose.xlu0.b32.cont [10/16] (narrow) %v386_v31, 8  ;;  %473 = vxpose.xlu1.b32.cont [10/16] (narrow) %v451_v32, 8 }
 0x153   : > { %409 = vxpose.xlu0.b32.cont [11/16] (narrow) %v388_v33, 8  ;;  %474 = vxpose.xlu1.b32.cont [11/16] (narrow) %v453_v34, 8 }
 0x157   : > { %410 = vxpose.xlu0.b32.cont [12/16] (narrow) %v390_v35, 8  ;;  %475 = vxpose.xlu1.b32.cont [12/16] (narrow) %v455_v36, 8 }
 0x15b   : > { %476 = vxpose.xlu1.b32.cont [13/16] (narrow) %v457_v37, 8  ;;  %411 = vxpose.xlu0.b32.cont [13/16] (narrow) %v392_v38, 8 }
 0x15f   : > { %477 = vxpose.xlu1.b32.cont [14/16] (narrow) %v459_v39, 8  ;;  %412 = vxpose.xlu0.b32.cont [14/16] (narrow) %v394_v40, 8 }
 0x163   : > { %478 = vxpose.xlu1.b32.cont [15/16] (narrow) %v461_v41, 8  ;;  %413 = vxpose.xlu0.b32.cont [15/16] (narrow) %v396_v42, 8 }
 0x167   : > { %479 = vxpose.xlu1.b32.end [16/16] (narrow) %v463_v43, 8  ;;  %414 = vxpose.xlu0.b32.end [16/16] (narrow) %v398_v44, 8 }
 0x16b   : > { %596 = vxpose.xlu1.b32.start [1/16] (narrow) %v565_v45, 8  ;;  %530 = vxpose.xlu0.b32.start [1/16] (narrow) %v499_v46, 8 }
 0x16f   : > { %597 = vxpose.xlu1.b32.cont [2/16] (narrow) %v567_v47, 8  ;;  %531 = vxpose.xlu0.b32.cont [2/16] (narrow) %v501_v48, 8 }
 0x173   : > { %598 = vxpose.xlu1.b32.cont [3/16] (narrow) %v569_v49, 8  ;;  %532 = vxpose.xlu0.b32.cont [3/16] (narrow) %v503_v50, 8 }
 0x177   : > { %599 = vxpose.xlu1.b32.cont [4/16] (narrow) %v571_v51, 8  ;;  %533 = vxpose.xlu0.b32.cont [4/16] (narrow) %v505_v52, 8 }
 0x17b   : > { %600 = vxpose.xlu1.b32.cont [5/16] (narrow) %v573_v53, 8  ;;  %534 = vxpose.xlu0.b32.cont [5/16] (narrow) %v507_v54, 8 }
 0x17f   : > { %601 = vxpose.xlu1.b32.cont [6/16] (narrow) %v575_v55, 8  ;;  %535 = vxpose.xlu0.b32.cont [6/16] (narrow) %v509_v56, 8 }
 0x183   : > { %602 = vxpose.xlu1.b32.cont [7/16] (narrow) %v577_v57, 8  ;;  %536 = vxpose.xlu0.b32.cont [7/16] (narrow) %v511_v58, 8 }
 0x187   : > { %603 = vxpose.xlu1.b32.cont [8/16] (narrow) %v579_v59, 8  ;;  %537 = vxpose.xlu0.b32.cont [8/16] (narrow) %v513_v60, 8 }
 0x18b   : > { %604 = vxpose.xlu1.b32.cont [9/16] (narrow) %v581_v61, 8  ;;  %538 = vxpose.xlu0.b32.cont [9/16] (narrow) %v515_v62, 8 }
 0x18f   : > { %605 = vxpose.xlu1.b32.cont [10/16] (narrow) %v583_v63, 8  ;;  %539 = vxpose.xlu0.b32.cont [10/16] (narrow) %v517_v0, 8 }
 0x193   : > { %606 = vxpose.xlu1.b32.cont [11/16] (narrow) %v585_v1, 8  ;;  %540 = vxpose.xlu0.b32.cont [11/16] (narrow) %v519_v2, 8 }
 0x197   : > { %607 = vxpose.xlu1.b32.cont [12/16] (narrow) %v587_v3, 8  ;;  %541 = vxpose.xlu0.b32.cont [12/16] (narrow) %v521_v4, 8 }
 0x19b   : > { %608 = vxpose.xlu1.b32.cont [13/16] (narrow) %v589_v5, 8  ;;  %542 = vxpose.xlu0.b32.cont [13/16] (narrow) %v523_v6, 8 }
 0x19f   : > { %609 = vxpose.xlu1.b32.cont [14/16] (narrow) %v591_v7, 8  ;;  %543 = vxpose.xlu0.b32.cont [14/16] (narrow) %v525_v8, 8 }
 0x1a3   : > { %610 = vxpose.xlu1.b32.cont [15/16] (narrow) %v593_v9, 8  ;;  %544 = vxpose.xlu0.b32.cont [15/16] (narrow) %v527_v10, 8 }
 0x1a7   : > { %611 = vxpose.xlu1.b32.end [16/16] (narrow) %v595_v11, 8  ;;  %545 = vxpose.xlu0.b32.end [16/16] (narrow) %v529_v12, 8 }
 0x1ab   : > { %v480_v13 = vpop.trf.xlu1  ;;  %v415_v14 = vpop.trf.xlu0 }
 0x1ac   : > { %741 = vst [vmem:[%s150_s18 + $0x2] sm:$0x3] %v480_v13  ;;  %431 = vst [vmem:[%s150_s18] sm:$0x3] %v415_v14 }
 0x1eb   : > { %v612_v15 = vpop.trf.xlu1  ;;  %v546_v16 = vpop.trf.xlu0 }
 0x1ec   : > { %743 = vst [vmem:[%s150_s18 + $0x6] sm:$0x3] %v612_v15  ;;  %742 = vst [vmem:[%s150_s18 + $0x4] sm:$0x3] %v546_v16 }
 0x1ed   : > { %860 = shalt.err (!%p857_p6)
}
 0x1ee   : > { %s861_s15 = scalar_lea.hbm %s1139_s3, 128  ;;  %s865_s22 = scalar_lea.hbm %s1189_s1, 256 }
 0x1ef   : > { %p862_p4 = scmp.ne.s32.totalorder %s1139_s3, %s861_s15  ;;  %p866_p1 = scmp.lt.u32.totalorder %s1139_s3, %s1189_s1 }
 0x1f0   : > { %p867_p2 = scmp.lt.u32.totalorder %s865_s22, %s861_s15  ;;  %p869_p8 = scmp.lt.u32.totalorder %s861_s15, %s1139_s3 }
 0x1f1   : > { %p863_p10 = pnand %p862_p4, %p1198_p9 }
 0x1f2   : > { %p868_p5 = por %p867_p2, %p866_p1 }
 0x1f3   : > { %p864_p12 = pneg %p863_p10 }
 0x1f4   : > { %p870_p11 = por %p869_p8, %p868_p5 }
 0x1f6   : > { %p871_p0 = pnand %p870_p11, %p864_p12 }
 0x1f8   : > { %874 = shalt.err (!%p871_p0)
}
 0x1f9   : > { %s934_s26 = smov 32   ;;  %s935_s28 = smov 2  }
 0x1fa   : > { %753 = dma.vmem_to_hbm [thread:$0]  (%p1198_p9), %s1134_s27, 128, %s1139_s3, %s631_s4, %s934_s26, %s934_s26, %s935_s28  }
 0x1fb PF: > { %s660_s18 = sand.u32 1, %s909_s6   ;;  %p1199_p7 = scmp.ne.s32.totalorder %s1194_s21, 0 }
 0x1fc   : > { %p1200_p13 = scmp.ge.s32.totalorder %s929_s11, 2  ;;  %s661_s29 = scalar_lea.sflag [#allocation5], %s660_s18 }
 0x1fe   : > { %p760_p3 = pnand %p1200_p13, %p1199_p7 }
 0x200   : > { %904 = dma.done.wait (!%p760_p3), %s661_s29, 128  }
 0x201   : > { %906 = vsyncadd (!%p760_p3), %s661_s29, 4294967168  ;;  %s17_s11 = sadd.s32 1, %s929_s11   ;;  %s1201_s6 = smov %s913_s7 }
 0x202   : > { %p14_p6 = scmp.ge.s32.totalorder %s17_s11, 4   ;;  %s1202_s7 = smov %s917_s8 }
 0x203   : > { %s1203_s8 = smov %s1002_s20  ;;  %s1204_s9 = smov %s925_s10 }
 0x204   : > { %s1205_s10 = smov %s1207_s14  ;;  %16 = sbr.rel (!%p14_p6) target bundleno = 6 (0x6), region = 135 }
 0x20b   :  { %666 = vsyncpa [#allocation4], 1 }
 0x20c   :  { %668 = vsyncpa [#allocation4 + $0x1], 1 }
 0x20d   :  { %669 = vsyncpa [#allocation5], 1 }
 0x20e   :  { %671 = vsyncpa [#allocation5 + $0x1], 1 }

</bundles_post_ra>
